<compile_context>
chip_gen: v6e
topology: v6e:2x2x1
jax: 0.10.0
libtpu: 0.0.40
codegen_flags: <defaults>
</compile_context>

<pallas_src>
import functools
import math
import numpy as np
import jax
import jax.numpy as jnp
from jax import lax
from jax.experimental import pallas as pl
from jax.experimental.pallas import tpu as pltpu


# ---------------- small helpers ----------------

def _round_up(x, m):
    return (x + m - 1) // m * m


def _cdiv(a, b):
    return (a + b - 1) // b


# ---------------- parameter construction (plain JAX glue) ----------------

def get_embedding_jax(max_seq_len, embedding_dim):
    """Sinusoidal table, matches the PyTorch get_embedding (rel_pos_init=0)."""
    num_embeddings = 2 * max_seq_len + 1
    half_dim = embedding_dim // 2
    scale = math.log(10000.0) / (half_dim - 1)
    freq = jnp.exp(jnp.arange(half_dim, dtype=jnp.float32) * -scale)
    ang = jnp.arange(num_embeddings, dtype=jnp.float32)[:, None] * freq[None, :]
    emb = jnp.concatenate([jnp.sin(ang), jnp.cos(ang)], axis=1)
    emb = emb.reshape(num_embeddings, -1)
    if embedding_dim % 2 == 1:
        emb = jnp.concatenate(
            [emb, jnp.zeros((num_embeddings, 1), jnp.float32)], axis=1)
    return emb  # (2*max_len+1, H)


# ---------------- hoisted precompute (run once per weight update) ----------------

def precompute_concat_params(pe_s_tab, pe_e_tab, W, bias,
                             compute_dtype=jnp.bfloat16):
    """Pre-project the PE tables through the Linear weight slabs and fold bias.

    W is the pre-transposed Linear weight, shape (3H, H), so that
    out = x @ W[:H] + pe_s @ W[H:2H] + pe_e @ W[2H:] + bias.
    Returns (w0, ws_proj, we_proj) in `compute_dtype`, tables padded to a
    multiple of 128 rows (zero rows never selected by valid positions).
    """
    N, H = pe_s_tab.shape
    N_pad = _round_up(N, 128)
    pe_s_p = jnp.pad(pe_s_tab.astype(jnp.float32), ((0, N_pad - N), (0, 0)))
    pe_e_p = jnp.pad(pe_e_tab.astype(jnp.float32), ((0, N_pad - N), (0, 0)))
    hp = lax.Precision.HIGHEST  # amortized over many forwards; keep accurate
    half_b = 0.5 * bias.astype(jnp.float32).reshape(1, H)
    ws_proj = jnp.dot(pe_s_p, W[H:2 * H].astype(jnp.float32), precision=hp) + half_b
    we_proj = jnp.dot(pe_e_p, W[2 * H:3 * H].astype(jnp.float32), precision=hp) + half_b
    w0 = W[0:H]
    return (w0.astype(compute_dtype),
            ws_proj.astype(compute_dtype),
            we_proj.astype(compute_dtype))


# ---------------- Pallas kernel ----------------

def se_pos_concat_kernel(pos_ref, x_ref, w0_ref, ws_ref, we_ref, o_ref):
    N_pad = ws_ref.shape[0]
    cdt = x_ref.dtype

    # Positions: one merged (TM, 2) int32 block.
    ps = pos_ref[:, 0:1]                                     # (TM, 1)
    pe = pos_ref[:, 1:2]                                     # (TM, 1)

    # Lane-dense one-hot selectors (exact 0/1 in compute dtype).  A (1, N_pad)
    # iota broadcast against the position column; no OR pass, no offset add.
    iota = lax.broadcasted_iota(jnp.int32, (1, N_pad), 1)    # (1, N_pad)
    oh_s = (iota == ps).astype(cdt)                          # (TM, N_pad)
    oh_e = (iota == pe).astype(cdt)                          # (TM, N_pad)

    # out = x @ W0 + onehot_s @ (PEs@W1 + b/2) + onehot_e @ (PEe@W2 + b/2)
    # All MXU matmuls, f32 accumulation.
    out = jnp.dot(x_ref[...], w0_ref[...], preferred_element_type=jnp.float32)
    out = out + jnp.dot(oh_s, ws_ref[...], preferred_element_type=jnp.float32)
    out = out + jnp.dot(oh_e, we_ref[...], preferred_element_type=jnp.float32)
    o_ref[...] = out.astype(o_ref.dtype)


# ---------------- forward wrapper ----------------

@functools.partial(jax.jit, static_argnames=("tm",))
def absolute_se_position_embedding_concat(inp, pos_s, pos_e,
                                          w0, ws_proj, we_proj, tm=512):
    """inp: (B,L,H); pos_s/pos_e: (B,L) int; w0/ws_proj/we_proj from precompute."""
    B, L, H = inp.shape
    N_pad = ws_proj.shape[0]
    cdtype = w0.dtype
    cbytes = jnp.dtype(cdtype).itemsize
    out_dtype = inp.dtype
    obytes = jnp.dtype(out_dtype).itemsize

    # ---- row tiling over M = B*L ----
    M = B * L
    row_align = 16 if cbytes < 4 else 8      # bf16 packs 2 rows / sublane
    if M >= 2 * tm:
        TM = tm
    else:
        # small problem: ~2 tiles while respecting the dtype row alignment
        TM = max(row_align, _round_up(_cdiv(M, 2), row_align))

    # ---- shrink TM until the estimated VMEM footprint fits the budget ----
    VMEM_BUDGET = 40 * 1024 * 1024

    def _est(tm_):
        return (2 * tm_ * H * cbytes            # x tile, double-buffered
                + 2 * tm_ * 2 * 4               # positions, double-buffered
                + 2 * tm_ * H * obytes          # out tile, double-buffered
                + (H * H + 2 * N_pad * H) * cbytes  # invariants, Buffered(1)
                + 2 * tm_ * N_pad * cbytes      # one-hot matmul operands
                + tm_ * H * 4)                  # f32 accumulator
    while TM > row_align and _est(TM) > VMEM_BUDGET:
        TM = max(row_align, TM // 2)

    M_pad = _round_up(M, TM)

    x2 = inp.reshape(M, H).astype(cdtype)
    pos = jnp.stack([pos_s.reshape(M), pos_e.reshape(M)], axis=1).astype(jnp.int32)
    if M_pad != M:
        x2 = jnp.pad(x2, ((0, M_pad - M), (0, 0)))
        pos = jnp.pad(pos, ((0, M_pad - M), (0, 0)))   # pad rows gather row 0; discarded

    grid = (M_pad // TM,)
    inv = pl.Buffered(1)   # grid-invariant operands: single VMEM buffer

    # NOTE: output last dim is H (<128 in this test) -> masked stores; lane-dense
    # row packing was not applied (only matters for production H < 128).
    out2 = pl.pallas_call(
        se_pos_concat_kernel,
        out_shape=jax.ShapeDtypeStruct((M_pad, H), out_dtype),
        grid=grid,
        in_specs=[
            pl.BlockSpec((TM, 2), lambda m: (m, 0)),                       # pos (s,e)
            pl.BlockSpec((TM, H), lambda m: (m, 0)),                       # activations
            pl.BlockSpec((H, H), lambda m: (0, 0), pipeline_mode=inv),     # W0
            pl.BlockSpec((N_pad, H), lambda m: (0, 0), pipeline_mode=inv),  # PEs@W1 + b/2
            pl.BlockSpec((N_pad, H), lambda m: (0, 0), pipeline_mode=inv),  # PEe@W2 + b/2
        ],
        out_specs=pl.BlockSpec((TM, H), lambda m: (m, 0)),
        compiler_params=pltpu.CompilerParams(
            dimension_semantics=("parallel",),
            vmem_limit_bytes=48 * 1024 * 1024),   # headroom on v7x's 64 MiB/TC
    )(pos, x2, w0, ws_proj, we_proj)

    return out2[:M].reshape(B, L, H)


# ---------------- pure-JAX reference ----------------

def ref_forward(inp, pos_s, pos_e, pe_s_tab, pe_e_tab, W, bias):
    B, L, H = inp.shape
    pe_s = pe_s_tab[pos_s.reshape(-1)].reshape(B, L, -1)
    pe_e = pe_e_tab[pos_e.reshape(-1)].reshape(B, L, -1)
    x = jnp.concatenate([inp, pe_s, pe_e], axis=-1)
    return jnp.dot(x, W, precision=lax.Precision.HIGHEST) + bias


# ---------------- main ----------------

if __name__ == "__main__":
    B, L, H = 2, 8, 32
    max_len = 64                      # small max_len for the synthetic test
    N = 2 * max_len + 1

    key = jax.random.PRNGKey(0)
    k_inp, k_w, k_b, k_ps, k_pe = jax.random.split(key, 5)

    # module parameters (deterministic, synthetic init)
    pe_tab = get_embedding_jax(max_len, H)                 # (N, H)
    pe_s_tab = pe_tab                                      # pe_s param
    pe_e_tab = pe_tab                                      # pe_e param (deepcopy)
    bound = 1.0 / math.sqrt(3 * H)
    W = jax.random.uniform(k_w, (3 * H, H), jnp.float32, -bound, bound)
    bias = jax.random.uniform(k_b, (H,), jnp.float32, -bound, bound)

    # inputs
    inp = jax.random.normal(k_inp, (B, L, H), jnp.float32)
    pos_s = jax.random.randint(k_ps, (B, L), 0, N, jnp.int32)
    pos_e = jax.random.randint(k_pe, (B, L), 0, N, jnp.int32)

    ref = ref_forward(inp, pos_s, pos_e, pe_s_tab, pe_e_tab, W, bias)

    # 1) fp32 compute path: tight structural check of the kernel.
    p32 = precompute_concat_params(pe_s_tab, pe_e_tab, W, bias, jnp.float32)
    out32 = absolute_se_position_embedding_concat(inp, pos_s, pos_e, *p32)
    out32 = jax.block_until_ready(out32)
    assert out32.shape == (B, L, H)
    np.testing.assert_allclose(np.asarray(out32), np.asarray(ref),
                               rtol=1e-5, atol=1e-5)

    # 2) bf16 compute path (performance configuration): bf16-level tolerance.
    pbf = precompute_concat_params(pe_s_tab, pe_e_tab, W, bias, jnp.bfloat16)
    outbf = absolute_se_position_embedding_concat(inp, pos_s, pos_e, *pbf)
    outbf = jax.block_until_ready(outbf)
    assert outbf.shape == (B, L, H)
    np.testing.assert_allclose(np.asarray(outbf), np.asarray(ref),
                               rtol=2e-2, atol=2e-2)

    print("KERNEL_OK")
</pallas_src>

<mosaic_0001>
module attributes {stable_mosaic.version = 11 : i64} {
  func.func @se_pos_concat_kernel(%arg0: i32, %arg1: memref<8x2xi32, #tpu.memory_space<vmem>>, %arg2: memref<8x32xf32, #tpu.memory_space<vmem>>, %arg3: memref<32x32xf32, #tpu.memory_space<vmem>>, %arg4: memref<256x32xf32, #tpu.memory_space<vmem>>, %arg5: memref<256x32xf32, #tpu.memory_space<vmem>>, %arg6: memref<8x32xf32, #tpu.memory_space<vmem>>) attributes {dimension_semantics = [#tpu.dimension_semantics<parallel>], iteration_bounds = array<i64: 2>, scalar_prefetch = 0 : i64, scratch_operands = 0 : i64, tpu.core_type = #tpu.core_type<tc>, window_params = [{transform_indices = @transform_0, window_bounds = array<i64: 8, 2>}, {transform_indices = @transform_1, window_bounds = array<i64: 8, 32>}, {pipeline_mode = #tpu.pipeline_mode<synchronous>, transform_indices = @transform_2, window_bounds = array<i64: 32, 32>}, {pipeline_mode = #tpu.pipeline_mode<synchronous>, transform_indices = @transform_3, window_bounds = array<i64: 256, 32>}, {pipeline_mode = #tpu.pipeline_mode<synchronous>, transform_indices = @transform_4, window_bounds = array<i64: 256, 32>}, {transform_indices = @transform_5, window_bounds = array<i64: 8, 32>}]} {
    %c0 = arith.constant 0 : index
    %c0_0 = arith.constant 0 : index
    %0 = vector.load %arg1[%c0, %c0_0] : memref<8x2xi32, #tpu.memory_space<vmem>>, vector<8x1xi32>
    %c0_1 = arith.constant 0 : index
    %c1 = arith.constant 1 : index
    %1 = vector.load %arg1[%c0_1, %c1] : memref<8x2xi32, #tpu.memory_space<vmem>>, vector<8x1xi32>
    %2 = tpu.iota {dimensions = array<i32: 1>} : vector<1x256xi32>
    %3 = vector.broadcast %2 : vector<1x256xi32> to vector<8x256xi32>
    %4 = vector.broadcast %0 : vector<8x1xi32> to vector<8x256xi32>
    %5 = arith.cmpi eq, %3, %4 : vector<8x256xi32>
    %6 = arith.extui %5 : vector<8x256xi1> to vector<8x256xi32>
    %7 = arith.sitofp %6 : vector<8x256xi32> to vector<8x256xf32>
    %8 = vector.broadcast %2 : vector<1x256xi32> to vector<8x256xi32>
    %9 = vector.broadcast %1 : vector<8x1xi32> to vector<8x256xi32>
    %10 = arith.cmpi eq, %8, %9 : vector<8x256xi32>
    %11 = arith.extui %10 : vector<8x256xi1> to vector<8x256xi32>
    %12 = arith.sitofp %11 : vector<8x256xi32> to vector<8x256xf32>
    %c0_2 = arith.constant 0 : index
    %c0_3 = arith.constant 0 : index
    %13 = vector.load %arg2[%c0_2, %c0_3] : memref<8x32xf32, #tpu.memory_space<vmem>>, vector<8x32xf32>
    %c0_4 = arith.constant 0 : index
    %c0_5 = arith.constant 0 : index
    %14 = vector.load %arg3[%c0_4, %c0_5] : memref<32x32xf32, #tpu.memory_space<vmem>>, vector<32x32xf32>
    %cst = arith.constant dense<0.000000e+00> : vector<8x32xf32>
    %15 = tpu.matmul %13, %14, %cst {dimension_numbers = #tpu.dot_dimension_numbers<[1], [0], [0], [1], [0, 0, 1, 1], [], []>} : vector<8x32xf32>, vector<32x32xf32>, vector<8x32xf32> -> vector<8x32xf32>
    %c0_6 = arith.constant 0 : index
    %c0_7 = arith.constant 0 : index
    %16 = vector.load %arg4[%c0_6, %c0_7] : memref<256x32xf32, #tpu.memory_space<vmem>>, vector<256x32xf32>
    %cst_8 = arith.constant dense<0.000000e+00> : vector<8x32xf32>
    %17 = tpu.matmul %7, %16, %cst_8 {dimension_numbers = #tpu.dot_dimension_numbers<[1], [0], [0], [1], [0, 0, 1, 1], [], []>} : vector<8x256xf32>, vector<256x32xf32>, vector<8x32xf32> -> vector<8x32xf32>
    %18 = arith.addf %15, %17 : vector<8x32xf32>
    %c0_9 = arith.constant 0 : index
    %c0_10 = arith.constant 0 : index
    %19 = vector.load %arg5[%c0_9, %c0_10] : memref<256x32xf32, #tpu.memory_space<vmem>>, vector<256x32xf32>
    %cst_11 = arith.constant dense<0.000000e+00> : vector<8x32xf32>
    %20 = tpu.matmul %12, %19, %cst_11 {dimension_numbers = #tpu.dot_dimension_numbers<[1], [0], [0], [1], [0, 0, 1, 1], [], []>} : vector<8x256xf32>, vector<256x32xf32>, vector<8x32xf32> -> vector<8x32xf32>
    %21 = arith.addf %18, %20 : vector<8x32xf32>
    %c0_12 = arith.constant 0 : index
    %c0_13 = arith.constant 0 : index
    %22 = vector.load %arg6[%c0_12, %c0_13] : memref<8x32xf32, #tpu.memory_space<vmem>>, vector<8x32xf32>
    tpu.vector_store %arg6[%c0_12, %c0_13], %21 {strides = array<i32>} : memref<8x32xf32, #tpu.memory_space<vmem>>, vector<8x32xf32>,
    return
  }
  func.func @transform_0(%arg0: i32) -> (i32, i32) {
    %c0_i32 = arith.constant 0 : i32
    %c0_i32_0 = arith.constant 0 : i32
    return %arg0, %c0_i32 : i32, i32
  }
  func.func @transform_1(%arg0: i32) -> (i32, i32) {
    %c0_i32 = arith.constant 0 : i32
    %c0_i32_0 = arith.constant 0 : i32
    return %arg0, %c0_i32 : i32, i32
  }
  func.func @transform_2(%arg0: i32) -> (i32, i32) {
    %c0_i32 = arith.constant 0 : i32
    %c0_i32_0 = arith.constant 0 : i32
    %c0_i32_1 = arith.constant 0 : i32
    return %c0_i32, %c0_i32_0 : i32, i32
  }
  func.func @transform_3(%arg0: i32) -> (i32, i32) {
    %c0_i32 = arith.constant 0 : i32
    %c0_i32_0 = arith.constant 0 : i32
    %c0_i32_1 = arith.constant 0 : i32
    return %c0_i32, %c0_i32_0 : i32, i32
  }
  func.func @transform_4(%arg0: i32) -> (i32, i32) {
    %c0_i32 = arith.constant 0 : i32
    %c0_i32_0 = arith.constant 0 : i32
    %c0_i32_1 = arith.constant 0 : i32
    return %c0_i32, %c0_i32_0 : i32, i32
  }
  func.func @transform_5(%arg0: i32) -> (i32, i32) {
    %c0_i32 = arith.constant 0 : i32
    %c0_i32_0 = arith.constant 0 : i32
    return %arg0, %c0_i32 : i32, i32
  }
}

</mosaic_0001>

<bundles_post_ra>
// kernel: absolute_se_position_embedding_concat.1
= control target key start
LH: loop header
LB: loop body
LE: loop exit
PB: predicated region body
PF: predicated region fallthrough
CT: control target
= control target key end

     0   :  { %10 = vsyncpa [#allocation3], 0  ;;  %s1175_s0 = inlined_call_operand.vmem [shape: s32[16,2], index: 0, kind: input, shape index: {}]   ;;  %s1176_s1 = inlined_call_operand.vmem [shape: f32[16,32], index: 1, kind: input, shape index: {}]   ;;  %s1177_s2 = inlined_call_operand.vmem [shape: f32[32,32], index: 2, kind: input, shape index: {}]   ;;  %s1178_s3 = inlined_call_operand.vmem [shape: f32[256,32], index: 3, kind: input, shape index: {}]   ;;  %s1179_s4 = inlined_call_operand.vmem [shape: f32[256,32], index: 4, kind: input, shape index: {}]   ;;  %s1180_s5 = inlined_call_operand.hbm [shape: f32[16,32], index: 5, kind: output, shape index: {}]  }
   0x1   :  { %12 = vsyncpa [#allocation3 + $0x1], 0  ;;  %s879_s18 = smov 0   ;;  %s881_s19 = smov 0  }
   0x2   :  { %s883_s20 = smov 0   ;;  %s885_s21 = smov 0  }
   0x3 LB: > { %s900_s22 = sadd.s32 4294967295, %s841_s21   ;;  %s629_s23 = sadd.s32 4294967294, %s841_s21   ;;  %s841_s21 = sphi %s885_s21, %s1186_s21   ;;  %s837_s20 = sphi %s883_s20, %s1185_s20   ;;  %s833_s19 = sphi %s881_s19, %s1184_s19   ;;  %s829_s18 = sphi %s879_s18, %s1183_s18  }
   0x4   : > { %s904_s24 = sadd.s32 1, %s841_s21   ;;  %s140_s25 = sadd.s32 1, %s837_s20 }
   0x5   : > { %s137_s26 = ssub.s32 %s841_s21, %s904_s24  ;;  %p150_p0 = scmp.ne.s32.totalorder %s837_s20, %s833_s19 }
   0x6   : > { %p138_p1 = scmp.eq.s32.totalorder %s137_s26, 0  ;;  %p151_p2 = scmp.eq.s32.totalorder %s900_s22, 1 }
   0x7   : > { %p156_p3 = scmp.ne.s32.totalorder %s833_s19, %s829_s18  ;;  %p157_p4 = scmp.eq.s32.totalorder %s629_s23, 1 }
   0x8   : > { %s915_s27 = scalar_select %p138_p1, %s837_s20, %s140_s25  }
   0x9   : > { %p917_p5 = por %p151_p2, %p150_p0  ;;  %p921_p6 = por %p157_p4, %p156_p3 }
   0xa   : > { %p632_p7 = scmp.ge.s32.totalorder %s841_s21, 1  ;;  %p198_p8 = scmp.lt.s32.totalorder %s841_s21, 3 }
   0xc   : > { %p199_p9 = pnand %p632_p7, %p198_p8 }
   0xd   : > { %p229_p10 = scmp.lt.s32.totalorder (!%p199_p9), %s900_s22, 1  ;;  %s226_s30 = sand.u32 (!%p199_p9), 1, %s833_s19  }
   0xe   : > { %202 = sbr.rel (%p199_p9) target bundleno = 369 (0x171), region = 40  ;;  %s633_s6 = sshll.u32 (!%p199_p9), %s226_s30, 3 }
   0xf   : > { %s228_s8 = scalar_lea.vmem (!%p199_p9), [#allocation2], %s633_s6  ;;  %s545_s14 = scalar_lea.sflag (!%p199_p9), [#allocation3], %s226_s30 }
  0x10   : > { %s558_s9 = sshll.u32 (!%p199_p9), %s228_s8, 4  ;;  %s559_s9 = int_to_ptr.vmem [resolvable:$true] %s558_s9 }
  0x11   : > { %s781_s15 = scalar_lea.vmem (!%p199_p9), %s559_s9, 128 }
  0x12   : > { %p782_p11 = scmp.ne.s32.totalorder (!%p199_p9), %s559_s9, %s781_s15 }
  0x13   : > { %v263_v0 = vld [vmem:[%s1177_s2 + $0x18] sm:$0xff]  ;;  %v843_v1 = vmov 0   ;;  %v844_v2 = vmov 0.0   ;;  %v262_v3 = vld [vmem:[%s1177_s2 + $0x10] sm:$0xff]  ;;  %s230_s13 = scalar_select %p229_p10, %s900_s22, 1  ;;  %v261_v8 = vld [vmem:[%s1177_s2 + $0x8] sm:$0xff] }
  0x14   : > { %779 = vset.pattern.permute.xlu0 %v843_v1  ;;  %724 = vmatprep.subr.mxu1 %v844_v2  ;;  %v295_v4 = vld [vmem:[%s1178_s3 + $0xf8] sm:$0xff]  ;;  %v294_v6 = vld [vmem:[%s1178_s3 + $0xf0] sm:$0xff]  ;;  %v260_v9 = vld [vmem:[%s1177_s2] sm:$0xff]  ;;  %vm845_vm0 = vmmov 0   ;;  %vm366_vm1 = vcmask 261120   ;;  %v846_v20 = vmov 1   ;;  %p783_p12 = pnand %p782_p11, %p917_p5 }
  0x15   : > { %v279_v5 = vld [vmem:[%s1178_s3 + $0x78] sm:$0xff]  ;;  %725 = vmatpush3.msra.mxu1 %v263_v0  ;;  %649 = vmatprep.subr.mxu0 %v295_v4  ;;  %v278_v7 = vld [vmem:[%s1178_s3 + $0x70] sm:$0xff]  ;;  %s634_s26 = sshll.u32 %s230_s13, 3  ;;  %v293_v10 = vld [vmem:[%s1178_s3 + $0xe8] sm:$0xff]  ;;  %s848_s13 = smov [#allocation2]  }
  0x16   : > { %726 = vmatprep.subr.mxu1 %v844_v2  ;;  %650 = vmatpush3.msra.mxu0 %v279_v5  ;;  %s232_s7 = scalar_lea.vmem %s1175_s0, %s634_s26  ;;  %s236_s10 = scalar_lea.vmem %s1176_s1, %s634_s26  ;;  %v277_v13 = vld [vmem:[%s1178_s3 + $0x68] sm:$0xff]  ;;  %v471_v14 = vld [vmem:[%s1179_s4 + $0xf8] sm:$0xff]  ;;  %v292_v15 = vld [vmem:[%s1178_s3 + $0xe0] sm:$0xff] }
  0x17   : > { %727 = vmatpush3.msra.mxu1 %v262_v3  ;;  %651 = vmatprep.subr.mxu0 %v294_v6  ;;  %v237_v11 = vld [vmem:[%s232_s7] sm:$0xff]  ;;  %v455_v16 = vld [vmem:[%s1179_s4 + $0x78] sm:$0xff]  ;;  %v470_v18 = vld [vmem:[%s1179_s4 + $0xf0] sm:$0xff]  ;;  %s646_s7 = sshll.u32 %s900_s22, 7  ;;  %p784_p13 = pneg %p783_p12 }
  0x18   : > { %728 = vmatprep.subr.mxu1 %v844_v2  ;;  %652 = vmatpush3.msra.mxu0 %v278_v7  ;;  %v259_v12 = vld [vmem:[%s236_s10] sm:$0xff]  ;;  %v291_v19 = vld [vmem:[%s1178_s3 + $0xd8] sm:$0xff]  ;;  %v454_v21 = vld [vmem:[%s1179_s4 + $0x70] sm:$0xff]  ;;  %s556_s12 = scalar_lea.hbm %s1180_s5, %s646_s7  ;;  %s785_s22 = sshll.u32 %s848_s13, 4  ;;  %s786_s22 = int_to_ptr.vmem [resolvable:$false] %s785_s22 }
  0x19   : > { %729 = vmatpush3.msra.mxu1 %v261_v8  ;;  %732 = vmatprep.mubr.msk.f32.mxu1 %vm845_vm0, %v844_v2  ;;  %v276_v17 = vld [vmem:[%s1178_s3 + $0x60] sm:$0xff]  ;;  %v275_v22 = vld [vmem:[%s1178_s3 + $0x58] sm:$0xff]  ;;  %v469_v23 = vld [vmem:[%s1179_s4 + $0xe8] sm:$0xff]  ;;  %s787_s16 = scalar_lea.vmem %s786_s22, 256  ;;  %p788_p0 = scmp.lt.s32.totalorder %s559_s9, %s786_s22 }
  0x1a   : > { %242 = vperm.xlu0 %779, %v237_v11   ;;  %730 = vmatprep.subr.mxu1 %v844_v2  ;;  %v290_v24 = vld [vmem:[%s1178_s3 + $0xd0] sm:$0xff]  ;;  %v453_v25 = vld [vmem:[%s1179_s4 + $0x68] sm:$0xff]  ;;  %v468_v27 = vld [vmem:[%s1179_s4 + $0xe0] sm:$0xff]  ;;  %p789_p1 = scmp.lt.s32.totalorder %s787_s16, %s781_s15 }
  0x1b   : > { %731 = vmatpush3.msra.mxu1 %v260_v9  ;;  %653 = vmatprep.subr.mxu0 %v293_v10  ;;  %v274_v26 = vld [vmem:[%s1178_s3 + $0x50] sm:$0xff]  ;;  %v289_v28 = vld [vmem:[%s1178_s3 + $0xc8] sm:$0xff]  ;;  %v452_v29 = vld [vmem:[%s1179_s4 + $0x60] sm:$0xff]  ;;  %v238_v9 = vlaneseq }
  0x1c   : > { %733 = vmatmul.mubr.msk.f32.vlgmr.msra.gmra.mxu1 %vm366_vm1, %v259_v12  ;;  %654 = vmatpush3.msra.mxu0 %v277_v13  ;;  %v273_v30 = vld [vmem:[%s1178_s3 + $0x48] sm:$0xff]  ;;  %v467_v31 = vld [vmem:[%s1179_s4 + $0xd8] sm:$0xff]  ;;  %v288_v32 = vld [vmem:[%s1178_s3 + $0xc0] sm:$0xff]  ;;  %v847_v13 = vmov 1.0   ;;  %p790_p2 = por %p789_p1, %p788_p0 }
  0x1d   : > { %689 = vmatprep.subr.mxu1 %v471_v14  ;;  %655 = vmatprep.subr.mxu0 %v292_v15  ;;  %v451_v33 = vld [vmem:[%s1179_s4 + $0x58] sm:$0xff]  ;;  %v272_v34 = vld [vmem:[%s1178_s3 + $0x40] sm:$0xff]  ;;  %v466_v35 = vld [vmem:[%s1179_s4 + $0xd0] sm:$0xff]  ;;  %v239_v10 = vand.u32 127, %v238_v9 }
  0x1e   : > { %780 = vset.pattern.permute.xlu0 %v846_v20  ;;  %690 = vmatpush3.msra.mxu1 %v455_v16  ;;  %v287_v36 = vld [vmem:[%s1178_s3 + $0xb8] sm:$0xff]  ;;  %v450_v37 = vld [vmem:[%s1179_s4 + $0x50] sm:$0xff]  ;;  %v465_v39 = vld [vmem:[%s1179_s4 + $0xc8] sm:$0xff]  ;;  %p791_p3 = pnand %p790_p2, %p784_p13 }
  0x1f   : > { %251 = vperm.xlu0 %780, %v237_v11   ;;  %656 = vmatpush3.msra.mxu0 %v276_v17  ;;  %v271_v38 = vld [vmem:[%s1178_s3 + $0x38] sm:$0xff]  ;;  %v286_v40 = vld [vmem:[%s1178_s3 + $0xb0] sm:$0xff]  ;;  %v449_v41 = vld [vmem:[%s1179_s4 + $0x48] sm:$0xff]  ;;  %v240_v11 = vadd.s32 128, %v239_v10 }
  0x20   : > { %691 = vmatprep.subr.mxu1 %v470_v18  ;;  %657 = vmatprep.subr.mxu0 %v291_v19  ;;  %v270_v42 = vld [vmem:[%s1178_s3 + $0x30] sm:$0xff]  ;;  %v464_v43 = vld [vmem:[%s1179_s4 + $0xc0] sm:$0xff]  ;;  %v285_v44 = vld [vmem:[%s1178_s3 + $0xa8] sm:$0xff] }
  0x21   : > { %692 = vmatpush3.msra.mxu1 %v454_v21  ;;  %658 = vmatpush3.msra.mxu0 %v275_v22  ;;  %v448_v45 = vld [vmem:[%s1179_s4 + $0x40] sm:$0xff]  ;;  %v269_v46 = vld [vmem:[%s1178_s3 + $0x28] sm:$0xff]  ;;  %v463_v47 = vld [vmem:[%s1179_s4 + $0xb8] sm:$0xff] }
  0x22   : > { %693 = vmatprep.subr.mxu1 %v469_v23  ;;  %659 = vmatprep.subr.mxu0 %v290_v24  ;;  %v284_v48 = vld [vmem:[%s1178_s3 + $0xa0] sm:$0xff]  ;;  %v447_v49 = vld [vmem:[%s1179_s4 + $0x38] sm:$0xff]  ;;  %v462_v51 = vld [vmem:[%s1179_s4 + $0xb0] sm:$0xff] }
  0x23   : > { %694 = vmatpush3.msra.mxu1 %v453_v25  ;;  %660 = vmatpush3.msra.mxu0 %v274_v26  ;;  %v268_v50 = vld [vmem:[%s1178_s3 + $0x20] sm:$0xff]  ;;  %v283_v52 = vld [vmem:[%s1178_s3 + $0x98] sm:$0xff]  ;;  %v446_v53 = vld [vmem:[%s1179_s4 + $0x30] sm:$0xff] }
  0x24   : > { %695 = vmatprep.subr.mxu1 %v468_v27  ;;  %661 = vmatprep.subr.mxu0 %v289_v28  ;;  %v267_v54 = vld [vmem:[%s1178_s3 + $0x18] sm:$0xff]  ;;  %v461_v55 = vld [vmem:[%s1179_s4 + $0xa8] sm:$0xff]  ;;  %v282_v56 = vld [vmem:[%s1178_s3 + $0x90] sm:$0xff] }
  0x25   : > { %696 = vmatpush3.msra.mxu1 %v452_v29  ;;  %662 = vmatpush3.msra.mxu0 %v273_v30  ;;  %v445_v57 = vld [vmem:[%s1179_s4 + $0x28] sm:$0xff]  ;;  %v266_v58 = vld [vmem:[%s1178_s3 + $0x10] sm:$0xff]  ;;  %v460_v59 = vld [vmem:[%s1179_s4 + $0xa0] sm:$0xff] }
  0x26   : > { %697 = vmatprep.subr.mxu1 %v467_v31  ;;  %663 = vmatprep.subr.mxu0 %v288_v32  ;;  %v281_v60 = vld [vmem:[%s1178_s3 + $0x88] sm:$0xff]  ;;  %v444_v61 = vld [vmem:[%s1179_s4 + $0x20] sm:$0xff]  ;;  %v459_v63 = vld [vmem:[%s1179_s4 + $0x98] sm:$0xff] }
  0x27   : > { %698 = vmatpush3.msra.mxu1 %v451_v33  ;;  %664 = vmatpush3.msra.mxu0 %v272_v34  ;;  %v265_v62 = vld [vmem:[%s1178_s3 + $0x8] sm:$0xff]  ;;  %v280_v0 = vld [vmem:[%s1178_s3 + $0x80] sm:$0xff]  ;;  %v443_v1 = vld [vmem:[%s1179_s4 + $0x18] sm:$0xff] }
  0x28   : > { %699 = vmatprep.subr.mxu1 %v466_v35  ;;  %665 = vmatprep.subr.mxu0 %v287_v36  ;;  %v264_v2 = vld [vmem:[%s1178_s3] sm:$0xff]  ;;  %v458_v3 = vld [vmem:[%s1179_s4 + $0x90] sm:$0xff]  ;;  %v457_v5 = vld [vmem:[%s1179_s4 + $0x88] sm:$0xff] }
  0x29   : > { %700 = vmatpush3.msra.mxu1 %v450_v37  ;;  %666 = vmatpush3.msra.mxu0 %v271_v38  ;;  %v442_v4 = vld [vmem:[%s1179_s4 + $0x10] sm:$0xff]  ;;  %v441_v6 = vld [vmem:[%s1179_s4 + $0x8] sm:$0xff]  ;;  %v456_v7 = vld [vmem:[%s1179_s4 + $0x80] sm:$0xff] }
  0x2a   : > { %701 = vmatprep.subr.mxu1 %v465_v39  ;;  %667 = vmatprep.subr.mxu0 %v286_v40  ;;  %v440_v8 = vld [vmem:[%s1179_s4] sm:$0xff] }
  0x2b   : > { %702 = vmatpush3.msra.mxu1 %v449_v41  ;;  %668 = vmatpush3.msra.mxu0 %v270_v42 }
  0x2c   : > { %703 = vmatprep.subr.mxu1 %v464_v43  ;;  %669 = vmatprep.subr.mxu0 %v285_v44 }
  0x2d   : > { %704 = vmatpush3.msra.mxu1 %v448_v45  ;;  %670 = vmatpush3.msra.mxu0 %v269_v46 }
  0x2e   : > { %705 = vmatprep.subr.mxu1 %v463_v47  ;;  %671 = vmatprep.subr.mxu0 %v284_v48 }
  0x2f   : > { %706 = vmatpush3.msra.mxu1 %v447_v49  ;;  %672 = vmatpush3.msra.mxu0 %v268_v50 }
  0x30   : > { %707 = vmatprep.subr.mxu1 %v462_v51  ;;  %673 = vmatprep.subr.mxu0 %v283_v52 }
  0x31   : > { %708 = vmatpush3.msra.mxu1 %v446_v53  ;;  %674 = vmatpush3.msra.mxu0 %v267_v54 }
  0x32   : > { %709 = vmatprep.subr.mxu1 %v461_v55  ;;  %675 = vmatprep.subr.mxu0 %v282_v56 }
  0x33   : > { %710 = vmatpush3.msra.mxu1 %v445_v57  ;;  %676 = vmatpush3.msra.mxu0 %v266_v58 }
  0x34   : > { %711 = vmatprep.subr.mxu1 %v460_v59  ;;  %677 = vmatprep.subr.mxu0 %v281_v60 }
  0x35   : > { %712 = vmatpush3.msra.mxu1 %v444_v61  ;;  %678 = vmatpush3.msra.mxu0 %v265_v62 }
  0x36   : > { %713 = vmatprep.subr.mxu1 %v459_v63  ;;  %679 = vmatprep.subr.mxu0 %v280_v0 }
  0x37   : > { %714 = vmatpush3.msra.mxu1 %v443_v1  ;;  %680 = vmatpush3.msra.mxu0 %v264_v2 }
  0x38   : > { %715 = vmatprep.subr.mxu1 %v458_v3 }
  0x39   : > { %716 = vmatpush3.msra.mxu1 %v442_v4 }
  0x3a   : > { %717 = vmatprep.subr.mxu1 %v457_v5 }
  0x3b   : > { %718 = vmatpush3.msra.mxu1 %v441_v6 }
  0x3c   : > { %719 = vmatprep.subr.mxu1 %v456_v7 }
  0x3d   : > { %720 = vmatpush3.msra.mxu1 %v440_v8 }
  0x95   : > { %v243_v12 = vpop.permute.xlu0 %242 }
  0x96   : > { %vm244_vm2 = vcmp.eq.s32.totalorder %v239_v10, %v243_v12  ;;  %vm245_vm3 = vcmp.eq.s32.totalorder %v240_v11, %v243_v12 }
  0x97   : > { %640 = vmatprep.mubr.msk.f32.mxu0 %vm245_vm3, %v847_v13 }
  0x98   : > { %641 = vmatmul.mubr.msk.f32.vlgmr.msra.gmra.mxu0 %vm244_vm2, %v847_v13 }
  0x9a   : > { %v252_v14 = vpop.permute.xlu0 %251 }
  0x9b   : > { %vm253_vm4 = vcmp.eq.s32.totalorder %v239_v10, %v252_v14  ;;  %vm254_vm5 = vcmp.eq.s32.totalorder %v240_v11, %v252_v14 }
  0x9c   : > { %643 = vmatprep.mubr.msk.f32.mxu1 %vm254_vm5, %v847_v13 }
  0x9d   : > { %644 = vmatmul.mubr.msk.f32.vlgmr.msra.gmra.mxu1 %vm253_vm4, %v847_v13 }
  0xdc   : > { %v436_v15 = vpop.f32.mrf.mxu1 }
  0xde   : > { %v734_v16 = vpop.f32.mrf.mxu1 }
 0x158   : > { %v681_v17 = vpop.f32.mrf.mxu0 }
 0x15a   : > { %v682_v18 = vpop.f32.mrf.mxu0 }
 0x15b   : > { %v683_v19 = vadd.f32 %v682_v18, %v681_v17 }
 0x15d   : > { %v721_v20 = vpop.f32.mrf.mxu1  ;;  %v437_v22 = vadd.f32 %v683_v19, %v436_v15 }
 0x15f   : > { %v722_v21 = vpop.f32.mrf.mxu1 }
 0x160   : > { %v723_v23 = vadd.f32 %v722_v21, %v721_v20 }
 0x162   : > { %v542_v24 = vadd.f32 %v723_v23, %v437_v22 }
 0x164   : > { %543 = vst.msk [vmem:[%s228_s8] sm:$0xff] %vm366_vm1, %v542_v24 }
 0x165   : > { %794 = shalt.err (!%p791_p3)
}
 0x166   : > { %s795_s17 = scalar_lea.hbm %s556_s12, 128  ;;  %s799_s26 = scalar_lea.hbm %s1180_s5, 256 }
 0x167   : > { %p796_p4 = scmp.ne.s32.totalorder %s556_s12, %s795_s17  ;;  %p800_p9 = scmp.lt.s32.totalorder %s556_s12, %s1180_s5 }
 0x168   : > { %p801_p10 = scmp.lt.s32.totalorder %s799_s26, %s795_s17 }
 0x169   : > { %p797_p7 = pnand %p796_p4, %p917_p5 }
 0x16a   : > { %p802_p11 = por %p801_p10, %p800_p9 }
 0x16b   : > { %p798_p8 = pneg %p797_p7 }
 0x16d   : > { %p803_p12 = pnand %p802_p11, %p798_p8 }
 0x16f   : > { %806 = shalt.err (!%p803_p12)
}
 0x170   : > { %735 = dma.vmem_to_hbm [thread:$0]  (%p917_p5), %s559_s9, 128, %s556_s12, %s545_s14  }
 0x171 PF: > { %p741_p13 = scmp.ge.s32.totalorder %s841_s21, 2  ;;  %s570_s7 = sand.u32 1, %s829_s18  }
 0x172   : > { %s571_s8 = scalar_lea.sflag [#allocation3], %s570_s7 }
 0x173   : > { %p738_p0 = pnand %p741_p13, %p921_p6 }
 0x175   : > { %p739_p1 = pneg %p738_p0 }
 0x177   : > { %824 = dma.done.wait (%p739_p1), %s571_s8, 128  }
 0x178   : > { %826 = vsyncadd (%p739_p1), %s571_s8, 4294967168  ;;  %p15_p2 = scmp.ge.s32.totalorder %s904_s24, 4   ;;  %s1183_s18 = smov %s833_s19 }
 0x179   : > { %s1184_s19 = smov %s837_s20  ;;  %s1185_s20 = smov %s915_s27 }
 0x17a   : > { %s1186_s21 = smov %s904_s24  ;;  %17 = sbr.rel (!%p15_p2) target bundleno = 3 (0x3), region = 78 }
 0x17f   :  { %576 = vsyncpa [#allocation3], 1 }
 0x180   :  { %578 = vsyncpa [#allocation3 + $0x1], 1 }

</bundles_post_ra>
